<compile_context>
chip_gen: v6e
topology: v6e:2x2x1
jax: 0.10.0
libtpu: 0.0.40
codegen_flags: <defaults>
</compile_context>

<pallas_src>
import functools

import jax
import jax.numpy as jnp
from jax.experimental import pallas as pl
from jax.experimental.pallas import tpu as pltpu


# ----------------------- per-generation tuning knobs ------------------------

def _device_kind():
    try:
        return jax.devices()[0].device_kind.lower()
    except Exception:
        return ""


_KIND = _device_kind()
_IS_V5E = ("v5e" in _KIND) or ("v5 lite" in _KIND) or ("v5litepod" in _KIND)
_BIG_VMEM = any(t in _KIND for t in ("v5", "v6"))        # 128-MiB-VMEM parts
_MAX_ROW_TILE = 1024 if _BIG_VMEM else 512               # v7x (64 MiB): conservative
_VMEM_LIMIT = (64 if _BIG_VMEM else 32) * 1024 * 1024


def _pick_row_tile(n, max_tile=_MAX_ROW_TILE):
    # A block whose row dim equals the full array row count is always legal;
    # otherwise use max_tile (a multiple of 16, so bf16 (16,128) tiling holds)
    # and let the tail block be partial (OOB output rows are dropped).
    return n if n <= max_tile else max_tile


# ----------------------------- Pallas kernels ------------------------------

def _matmul_bias_kernel(x_ref, w_ref, b_ref, o_ref):
    o_ref[...] = (
        jnp.dot(x_ref[...], w_ref[...], preferred_element_type=jnp.float32)
        + b_ref[...]
    ).astype(o_ref.dtype)


def matmul_bias(x, w, b, out_dtype=jnp.float32):
    """out = x @ w + b. x:(M,K), w:(K,N), b:(N,) -> (M,N). Row-tiled, no padding."""
    M, K = x.shape
    Kw, N = w.shape
    assert K == Kw
    tm = _pick_row_tile(M)
    return pl.pallas_call(
        _matmul_bias_kernel,
        out_shape=jax.ShapeDtypeStruct((M, N), out_dtype),
        grid=(pl.cdiv(M, tm),),
        in_specs=[
            pl.BlockSpec((tm, K), lambda i: (i, 0)),
            pl.BlockSpec((K, N), lambda i: (0, 0)),
            pl.BlockSpec((1, N), lambda i: (0, 0)),
        ],
        out_specs=pl.BlockSpec((tm, N), lambda i: (i, 0)),
        compiler_params=pltpu.CompilerParams(
            dimension_semantics=("parallel",), vmem_limit_bytes=_VMEM_LIMIT),
    )(x, w, b.reshape(1, N))


def _fused_gate_kernel(patch_ref, phi_ref, tw_ref, pw_ref, pb_ref, o_ref):
    # theta = patches @ theta_w, fused so theta never round-trips through HBM.
    theta = jnp.dot(patch_ref[...], tw_ref[...], preferred_element_type=jnp.float32)
    f = jnp.maximum(theta + phi_ref[...], 0.0)               # relu(theta_x + phi_g), f32
    # psi: contract the inter axis of BOTH operands (q@k^T style) so the result
    # comes out lane-dense (rows in lanes) -> unmasked stores.
    logits = jax.lax.dot_general(
        pw_ref[...], f,
        dimension_numbers=(((1,), (1,)), ((), ())),
        preferred_element_type=jnp.float32)                   # (8, tm), psi_w replicated
    o_ref[...] = jax.nn.sigmoid(logits[0:1, :] + pb_ref[0])[None]   # (1, 1, tm)


def attention_gate(patches_bf16, phi_rows_bf16, theta_w_bf16, psi_w_row, psi_b):
    """sigmoid(psi(relu(patches@theta_w + phi))) per row -> (Nt,) f32."""
    Nt, KC = patches_bf16.shape
    inter = theta_w_bf16.shape[1]
    tm = _pick_row_tile(Nt)
    G = pl.cdiv(Nt, tm)
    psi_w_rep = jnp.tile(psi_w_row.reshape(1, inter), (8, 1))   # MXU-friendly (8,inter) lhs
    gate = pl.pallas_call(
        _fused_gate_kernel,
        out_shape=jax.ShapeDtypeStruct((G, 1, tm), jnp.float32),
        grid=(G,),
        in_specs=[
            pl.BlockSpec((tm, KC), lambda i: (i, 0)),
            pl.BlockSpec((tm, inter), lambda i: (i, 0)),
            pl.BlockSpec((KC, inter), lambda i: (0, 0)),
            pl.BlockSpec((8, inter), lambda i: (0, 0)),
            pl.BlockSpec(memory_space=pltpu.MemorySpace.SMEM),   # psi bias scalar
        ],
        out_specs=pl.BlockSpec((1, 1, tm), lambda i: (i, 0, 0)),
        compiler_params=pltpu.CompilerParams(
            dimension_semantics=("parallel",), vmem_limit_bytes=_VMEM_LIMIT),
    )(patches_bf16, phi_rows_bf16, theta_w_bf16, psi_w_rep, psi_b.reshape(1))
    # Tail lanes (if Nt % tm != 0) hold values from unspecified padded reads and
    # are sliced off here; keep this slice if the tiling strategy changes.
    return gate.reshape(G * tm)[:Nt]


def _wy_stats_kernel(x_ref, att_ref, w_ref, sum_ref, sumsq_ref, *wy_out, nx):
    # Pass 1: per-channel sum / sumsq of wy = (att*x)@W (the W bias cancels under
    # batch-stat BN). Rows beyond nx (partial tail block or clamped excess
    # megacore block) are masked to zero BEFORE the matmul.
    @pl.when(pl.program_id(1) == 0)
    def _():
        sum_ref[...] = jnp.zeros_like(sum_ref)
        sumsq_ref[...] = jnp.zeros_like(sumsq_ref)

    tm = x_ref.shape[0]
    blk = pl.program_id(0) * pl.num_programs(1) + pl.program_id(1)
    rows = blk * tm + jax.lax.broadcasted_iota(jnp.int32, (tm, 1), 0)
    y = jnp.where(rows < nx, x_ref[...] * att_ref[...], 0).astype(jnp.bfloat16)
    wy = jnp.dot(y, w_ref[...], preferred_element_type=jnp.float32)
    sum_ref[...] += jnp.sum(wy, axis=0).reshape(sum_ref.shape)
    sumsq_ref[...] += jnp.sum(wy * wy, axis=0).reshape(sumsq_ref.shape)
    if wy_out:                                   # cached-wy (v5e large-C) variant
        wy_out[0][...] = wy.astype(wy_out[0].dtype)


def _wy_apply_kernel(x_ref, att_ref, w_ref, scale_ref, shift_ref, o_ref):
    # Pass 2 (default): recompute wy per tile, apply the folded BN affine.
    y = (x_ref[...] * att_ref[...]).astype(jnp.bfloat16)
    wy = jnp.dot(y, w_ref[...], preferred_element_type=jnp.float32)
    o_ref[...] = wy * scale_ref[...] + shift_ref[...]


def _wy_affine_kernel(wy_ref, scale_ref, shift_ref, o_ref):
    # Pass 2 (cached-wy): affine only, no matmul.
    o_ref[...] = wy_ref[...].astype(jnp.float32) * scale_ref[...] + shift_ref[...]


def gated_conv_bn(x_rows_bf16, att_rows_bf16, W_w_bf16, bn_gamma, bn_beta,
                  eps=1e-5, cache_wy=False):
    """W_y = BatchNorm(Conv1x1x1(att*x)) with batch statistics, tiled two-pass."""
    Nx, C = x_rows_bf16.shape
    tm = _pick_row_tile(Nx)
    G = pl.cdiv(Nx, tm)

    # ---------------- pass 1: per-channel statistics ----------------
    if cache_wy:
        # v5e path (1 TC): no megacore split; also spill wy (bf16) so pass 2
        # skips the CxC matmul.  Streaming wy needs exactly-once block writes,
        # so the grid covers the blocks exactly.
        grid = (1, G)
    else:
        # 2-way leading split so v7x's two TensorCores each own a partial
        # accumulator; a no-op (just a 2-long outer loop) on 1-TC chips.
        grid = (2, pl.cdiv(G, 2))
    n_inner = grid[1]

    def row_map(c, i):
        # Clamp excess blocks (when 2*ceil(G/2) > G) onto the last valid block;
        # the kernel masks them out entirely via the nominal row index.
        return (jnp.minimum(c * n_inner + i, G - 1), 0)

    in_specs = [
        pl.BlockSpec((tm, C), row_map),
        pl.BlockSpec((tm, 1), row_map),
        pl.BlockSpec((C, C), lambda c, i: (0, 0)),
    ]
    acc_spec = pl.BlockSpec((1, 1, C), lambda c, i: (c, 0, 0))
    out_shapes = [jax.ShapeDtypeStruct((grid[0], 1, C), jnp.float32),
                  jax.ShapeDtypeStruct((grid[0], 1, C), jnp.float32)]
    out_specs = [acc_spec, acc_spec]
    if cache_wy:
        out_shapes.append(jax.ShapeDtypeStruct((Nx, C), jnp.bfloat16))
        out_specs.append(pl.BlockSpec((tm, C), row_map))

    outs = pl.pallas_call(
        functools.partial(_wy_stats_kernel, nx=Nx),
        out_shape=tuple(out_shapes),
        grid=grid,
        in_specs=in_specs,
        out_specs=tuple(out_specs),
        compiler_params=pltpu.CompilerParams(
            dimension_semantics=("parallel", "arbitrary"),
            vmem_limit_bytes=_VMEM_LIMIT),
    )(x_rows_bf16, att_rows_bf16, W_w_bf16)
    psum, psumsq = outs[0], outs[1]

    sums = jnp.sum(psum, axis=(0, 1))                       # (C,)
    sumsqs = jnp.sum(psumsq, axis=(0, 1))
    mean = sums / Nx
    var = jnp.maximum(sumsqs / Nx - mean * mean, 0.0)       # biased var (BN train mode)
    scale_vec = bn_gamma * jax.lax.rsqrt(var + eps)
    shift_vec = bn_beta - mean * scale_vec                  # W conv bias cancels exactly
    scale = scale_vec.reshape(1, C)
    shift = shift_vec.reshape(1, C)

    # ---------------- pass 2: apply the folded affine ----------------
    params2 = pltpu.CompilerParams(dimension_semantics=("parallel",),
                                   vmem_limit_bytes=_VMEM_LIMIT)
    if cache_wy:
        wy_cached = outs[2]
        return pl.pallas_call(
            _wy_affine_kernel,
            out_shape=jax.ShapeDtypeStruct((Nx, C), jnp.float32),
            grid=(G,),
            in_specs=[pl.BlockSpec((tm, C), lambda i: (i, 0)),
                      pl.BlockSpec((1, C), lambda i: (0, 0)),
                      pl.BlockSpec((1, C), lambda i: (0, 0))],
            out_specs=pl.BlockSpec((tm, C), lambda i: (i, 0)),
            compiler_params=params2,
        )(wy_cached, scale, shift)

    return pl.pallas_call(
        _wy_apply_kernel,
        out_shape=jax.ShapeDtypeStruct((Nx, C), jnp.float32),
        grid=(G,),
        in_specs=[pl.BlockSpec((tm, C), lambda i: (i, 0)),
                  pl.BlockSpec((tm, 1), lambda i: (i, 0)),
                  pl.BlockSpec((C, C), lambda i: (0, 0)),
                  pl.BlockSpec((1, C), lambda i: (0, 0)),
                  pl.BlockSpec((1, C), lambda i: (0, 0))],
        out_specs=pl.BlockSpec((tm, C), lambda i: (i, 0)),
        compiler_params=params2,
    )(x_rows_bf16, att_rows_bf16, W_w_bf16, scale, shift)


# ------------------------- plain-JAX glue (resize) --------------------------

def _resize_indices(in_n, out_n):
    # PyTorch align_corners=False source-index convention.
    src = (jnp.arange(out_n, dtype=jnp.float32) + 0.5) * (in_n / out_n) - 0.5
    src = jnp.maximum(src, 0.0)
    i0 = jnp.clip(jnp.floor(src).astype(jnp.int32), 0, in_n - 1)
    i1 = jnp.minimum(i0 + 1, in_n - 1)
    w1 = src - i0.astype(jnp.float32)
    return i0, i1, w1


def trilinear_resize(x, out_size):
    """x: (B, D, H, W, C) -> (B, Do, Ho, Wo, C). Trilinear, align_corners=False.
    Keeps the input dtype (bf16 stays bf16) to limit HBM traffic."""
    dtype = x.dtype
    _, D, H, W, _ = x.shape
    for axis, (in_n, out_n) in zip((1, 2, 3), zip((D, H, W), out_size)):
        if in_n == out_n:
            continue  # identity under align_corners=False
        i0, i1, w1 = _resize_indices(in_n, out_n)
        x0 = jnp.take(x, i0, axis=axis)
        x1 = jnp.take(x, i1, axis=axis)
        shp = [1] * x.ndim
        shp[axis] = out_n
        w1b = w1.reshape(shp)
        x = (x0 * (1.0 - w1b) + x1 * w1b).astype(dtype)
    return x


# ------------------------------ parameters ---------------------------------

def init_params(key, in_channels, gating_channels, inter_channels=None, s=2):
    if inter_channels is None:
        inter_channels = in_channels // 2
        if inter_channels == 0:
            inter_channels = 1
    ks = jax.random.split(key, 8)

    def kaiming(k, shape, fan_in):
        return (jnp.sqrt(2.0 / fan_in) * jax.random.normal(k, shape)).astype(jnp.float32)

    # theta: Conv3d(C -> inter, k=stride=(2,2,2), no bias); PyTorch layout (inter,C,2,2,2)
    theta_w = kaiming(ks[0], (inter_channels, in_channels, s, s, s), in_channels * s ** 3)
    # phi: Conv3d(Cg -> inter, 1x1x1, bias)
    phi_w = kaiming(ks[1], (inter_channels, gating_channels), gating_channels).T    # (Cg, inter)
    phi_b = (0.01 * jax.random.normal(ks[2], (inter_channels,))).astype(jnp.float32)
    # psi: Conv3d(inter -> 1, 1x1x1, bias)
    psi_w = kaiming(ks[3], (1, inter_channels), inter_channels)                     # (1, inter)
    psi_b = (0.01 * jax.random.normal(ks[4], (1,))).astype(jnp.float32)
    # W: Conv3d(C -> C, 1x1x1, bias) + BatchNorm3d(C)
    W_w = kaiming(ks[5], (in_channels, in_channels), in_channels).T                 # (Cin, Cout)
    W_b = (0.01 * jax.random.normal(ks[6], (in_channels,))).astype(jnp.float32)
    bn_gamma = (1.0 + 0.02 * jax.random.normal(ks[7], (in_channels,))).astype(jnp.float32)
    bn_beta = jnp.zeros((in_channels,), jnp.float32)

    return dict(
        inter_channels=inter_channels, sub_sample_factor=s,
        theta_w=theta_w,
        phi_w=phi_w, phi_b=phi_b,
        psi_w=psi_w, psi_b=psi_b,
        W_w=W_w, W_b=W_b,            # W_b is mathematically cancelled by batch-stat BN
        bn_gamma=bn_gamma, bn_beta=bn_beta,
    )


# ------------------------------- forward -----------------------------------

def grid_attention_forward(params, x, g):
    """x: (B, C, D, H, W), g: (B, Cg, Dg, Hg, Wg) (NCDHW). Returns (W_y, sigm_psi_f)."""
    B, C, D, H, W = x.shape
    Bg, Cg, Dg, Hg, Wg = g.shape
    assert B == Bg
    s = params["sub_sample_factor"]
    Dt, Ht, Wt = D // s, H // s, W // s
    inter = params["inter_channels"]
    Nx = B * D * H * W
    Nt = B * Dt * Ht * Wt

    # One channels-last bf16 copy of x feeds BOTH the theta patches and x_rows
    # (removes one full f32 read of x vs two independent transposes).
    x_cl = jnp.transpose(x, (0, 2, 3, 4, 1)).astype(jnp.bfloat16)     # (B,D,H,W,C)
    x_rows = x_cl.reshape(Nx, C)
    patches = jnp.transpose(
        x_cl.reshape(B, Dt, s, Ht, s, Wt, s, C), (0, 1, 3, 5, 2, 4, 6, 7)
    ).reshape(Nt, s ** 3 * C)                                          # (Nt, 8C) bf16

    # theta weight (inter,C,s,s,s) -> (s*s*s*C, inter) matching the patch layout.
    theta_w = jnp.transpose(params["theta_w"], (2, 3, 4, 1, 0)).reshape(
        s ** 3 * C, inter).astype(jnp.bfloat16)
    phi_w = params["phi_w"].astype(jnp.bfloat16)
    W_w = params["W_w"].astype(jnp.bfloat16)

    # ---- phi path, carried in bf16 end-to-end (added to f32 accum in the gate) ----
    g_rows = jnp.transpose(g, (0, 2, 3, 4, 1)).reshape(B * Dg * Hg * Wg, Cg).astype(jnp.bfloat16)
    phi_rows = matmul_bias(g_rows, phi_w, params["phi_b"], out_dtype=jnp.bfloat16)
    phi_up = trilinear_resize(phi_rows.reshape(B, Dg, Hg, Wg, inter), (Dt, Ht, Wt))
    phi_up_rows = phi_up.reshape(Nt, inter)

    # ---- fused gate: sigmoid(psi(relu(theta(x) + phi_g))), lane-dense output ----
    att_rows_small = attention_gate(patches, phi_up_rows, theta_w,
                                    params["psi_w"], params["psi_b"])
    att_small = att_rows_small.reshape(B, Dt, Ht, Wt, 1)
    att_full = trilinear_resize(att_small, (D, H, W))                  # (B,D,H,W,1) f32

    # ---- y = att*x ; W_y = BN(Conv1x1x1(y)) with batch statistics ----
    att_rows = att_full.reshape(Nx, 1).astype(jnp.bfloat16)
    cache_wy = _IS_V5E and C >= 256          # CxC matmul turns MXU-bound on v5e there
    wy_rows = gated_conv_bn(x_rows, att_rows, W_w,
                            params["bn_gamma"], params["bn_beta"], cache_wy=cache_wy)

    W_y = jnp.transpose(wy_rows.reshape(B, D, H, W, C), (0, 4, 1, 2, 3))   # (B,C,D,H,W)
    sigm_psi_f = jnp.transpose(att_full, (0, 4, 1, 2, 3))                  # (B,1,D,H,W)
    return W_y, sigm_psi_f


# --------------------------------- main -------------------------------------

if __name__ == "__main__":
    key = jax.random.PRNGKey(0)
    k_p, k_x, k_g = jax.random.split(key, 3)

    B = 2
    in_channels = 8          # -> inter_channels = 4
    gating_channels = 16
    D = H = W = 8            # x spatial
    Dg = Hg = Wg = 4         # gating spatial (coarse)

    params = init_params(k_p, in_channels, gating_channels)

    x = jax.random.normal(k_x, (B, in_channels, D, H, W), dtype=jnp.float32)
    g = jax.random.normal(k_g, (B, gating_channels, Dg, Hg, Wg), dtype=jnp.float32)

    W_y, sigm_psi_f = grid_attention_forward(params, x, g)
    jax.block_until_ready((W_y, sigm_psi_f))

    assert W_y.shape == (B, in_channels, D, H, W)
    assert sigm_psi_f.shape == (B, 1, D, H, W)
    assert bool(jnp.all(jnp.isfinite(W_y))) and bool(jnp.all(jnp.isfinite(sigm_psi_f)))
    assert bool(jnp.all(sigm_psi_f >= 0.0)) and bool(jnp.all(sigm_psi_f <= 1.0))

    # Light self-check: the cached-wy (v5e large-C) BN path matches the default
    # recompute path within bf16-caching tolerance; this also exercises the
    # megacore-split stats grid with a clamped+masked excess block.
    kx2, ka2 = jax.random.split(jax.random.PRNGKey(1))
    xr = jax.random.normal(kx2, (96, in_channels)).astype(jnp.bfloat16)
    ar = jax.nn.sigmoid(jax.random.normal(ka2, (96, 1))).astype(jnp.bfloat16)
    Ww = params["W_w"].astype(jnp.bfloat16)
    o_rec = gated_conv_bn(xr, ar, Ww, params["bn_gamma"], params["bn_beta"], cache_wy=False)
    o_cac = gated_conv_bn(xr, ar, Ww, params["bn_gamma"], params["bn_beta"], cache_wy=True)
    jax.block_until_ready((o_rec, o_cac))
    assert bool(jnp.max(jnp.abs(o_rec - o_cac)) < 0.25)

    print("KERNEL_OK")
</pallas_src>

<mosaic_0001>
module attributes {stable_mosaic.version = 11 : i64} {
  func.func @_matmul_bias_kernel(%arg0: i32, %arg1: memref<128x16xbf16, #tpu.memory_space<vmem>>, %arg2: memref<16x4xbf16, #tpu.memory_space<vmem>>, %arg3: memref<1x4xf32, #tpu.memory_space<vmem>>, %arg4: memref<128x4xbf16, #tpu.memory_space<vmem>>) attributes {dimension_semantics = [#tpu.dimension_semantics<parallel>], iteration_bounds = array<i64: 1>, scalar_prefetch = 0 : i64, scratch_operands = 0 : i64, tpu.core_type = #tpu.core_type<tc>, window_params = [{transform_indices = @transform_0, window_bounds = array<i64: 128, 16>}, {pipeline_mode = #tpu.pipeline_mode<synchronous>, transform_indices = @transform_1, window_bounds = array<i64: 16, 4>}, {pipeline_mode = #tpu.pipeline_mode<synchronous>, transform_indices = @transform_2, window_bounds = array<i64: 1, 4>}, {transform_indices = @transform_3, window_bounds = array<i64: 128, 4>}]} {
    %c0 = arith.constant 0 : index
    %c0_0 = arith.constant 0 : index
    %0 = vector.load %arg1[%c0, %c0_0] : memref<128x16xbf16, #tpu.memory_space<vmem>>, vector<128x16xbf16>
    %c0_1 = arith.constant 0 : index
    %c0_2 = arith.constant 0 : index
    %1 = vector.load %arg2[%c0_1, %c0_2] : memref<16x4xbf16, #tpu.memory_space<vmem>>, vector<16x4xbf16>
    %cst = arith.constant dense<0.000000e+00> : vector<128x4xf32>
    %2 = tpu.matmul %0, %1, %cst {dimension_numbers = #tpu.dot_dimension_numbers<[1], [0], [0], [1], [0, 0, 1, 1], [], []>} : vector<128x16xbf16>, vector<16x4xbf16>, vector<128x4xf32> -> vector<128x4xf32>
    %c0_3 = arith.constant 0 : index
    %c0_4 = arith.constant 0 : index
    %3 = vector.load %arg3[%c0_3, %c0_4] : memref<1x4xf32, #tpu.memory_space<vmem>>, vector<1x4xf32>
    %4 = vector.broadcast %3 : vector<1x4xf32> to vector<128x4xf32>
    %5 = arith.addf %2, %4 : vector<128x4xf32>
    %6 = arith.truncf %5 : vector<128x4xf32> to vector<128x4xbf16>
    %c0_5 = arith.constant 0 : index
    %c0_6 = arith.constant 0 : index
    %7 = vector.load %arg4[%c0_5, %c0_6] : memref<128x4xbf16, #tpu.memory_space<vmem>>, vector<128x4xbf16>
    tpu.vector_store %arg4[%c0_5, %c0_6], %6 {strides = array<i32>} : memref<128x4xbf16, #tpu.memory_space<vmem>>, vector<128x4xbf16>,
    return
  }
  func.func @transform_0(%arg0: i32) -> (i32, i32) {
    %c0_i32 = arith.constant 0 : i32
    %c0_i32_0 = arith.constant 0 : i32
    return %arg0, %c0_i32 : i32, i32
  }
  func.func @transform_1(%arg0: i32) -> (i32, i32) {
    %c0_i32 = arith.constant 0 : i32
    %c0_i32_0 = arith.constant 0 : i32
    %c0_i32_1 = arith.constant 0 : i32
    return %c0_i32, %c0_i32_0 : i32, i32
  }
  func.func @transform_2(%arg0: i32) -> (i32, i32) {
    %c0_i32 = arith.constant 0 : i32
    %c0_i32_0 = arith.constant 0 : i32
    %c0_i32_1 = arith.constant 0 : i32
    return %c0_i32, %c0_i32_0 : i32, i32
  }
  func.func @transform_3(%arg0: i32) -> (i32, i32) {
    %c0_i32 = arith.constant 0 : i32
    %c0_i32_0 = arith.constant 0 : i32
    return %arg0, %c0_i32 : i32, i32
  }
}

</mosaic_0001>

<bundles_post_ra>
// kernel: tpu_custom_call.1
= control target key start
LH: loop header
LB: loop body
LE: loop exit
PB: predicated region body
PF: predicated region fallthrough
CT: control target
= control target key end

     0   :  { %vm86_vm0 = vcmask 130048   ;;  %vm272_vm1 = vcmask 27648   ;;  %s503_s1 = inlined_call_operand.vmem [shape: bf16[16,4], index: 1, kind: input, shape index: {}]   ;;  %s504_s0 = inlined_call_operand.vmem [shape: bf16[128,16], index: 0, kind: input, shape index: {}]   ;;  %s505_s2 = inlined_call_operand.vmem [shape: f32[1,4], index: 2, kind: input, shape index: {}]   ;;  %s506_s3 = inlined_call_operand.vmem [shape: bf16[128,4], index: 3, kind: output, shape index: {}]  }
   0x1   :  { %v372_v0 = vld [vmem:[%s503_s1] sm:$0xff]   ;;  %v375_v3 = vld [vmem:[%s504_s0 + $0x8] sm:$0xff]   ;;  %v377_v5 = vld [vmem:[%s504_s0 + $0x10] sm:$0xff]  }
   0x2   :  { %v373_v1 = vld [vmem:[%s504_s0] sm:$0xff]   ;;  %352 = vmatprep.subr.bf16.mxu0 %v372_v0  ;;  %370 = vmatprep.subr.bf16.mxu1 %v372_v0  ;;  %v376_v4 = vld [vmem:[%s504_s0 + $0x28] sm:$0xff]   ;;  %v378_v6 = vld [vmem:[%s504_s0 + $0x30] sm:$0xff]  }
   0x3   :  { %v374_v2 = vld [vmem:[%s504_s0 + $0x20] sm:$0xff]   ;;  %353 = vmatpush3.bf16.msra.mxu0 %v372_v0  ;;  %371 = vmatpush3.bf16.msra.mxu1 %v372_v0  ;;  %v379_v7 = vld [vmem:[%s504_s0 + $0x18] sm:$0xff]  }
   0x4   :  { %354 = vmatprep.mubr.msk.bf16.mxu0 %vm86_vm0, %v373_v1  ;;  %362 = vmatprep.mubr.msk.bf16.mxu1 %vm86_vm0, %v374_v2  ;;  %v380_v8 = vld [vmem:[%s504_s0 + $0x38] sm:$0xff]   ;;  %v293_v9 = vld [vmem:[%s505_s2] ss:$0 sm:$0xff] }
   0x6   :  { %355 = vmatmul.mubr.msk.bf16.vlgmr.msra.gmra.mxu0 %vm86_vm0, %v375_v3  ;;  %363 = vmatmul.mubr.msk.bf16.vlgmr.msra.gmra.mxu1 %vm86_vm0, %v376_v4 }
   0x7   :  { %358 = vmatprep.mubr.msk.bf16.mxu0 %vm86_vm0, %v377_v5  ;;  %366 = vmatprep.mubr.msk.bf16.mxu1 %vm86_vm0, %v378_v6 }
   0xe   :  { %359 = vmatmul.mubr.msk.bf16.gmra.mxu0 %vm86_vm0, %v379_v7  ;;  %367 = vmatmul.mubr.msk.bf16.gmra.mxu1 %vm86_vm0, %v380_v8 }
  0xc6   :  { %v356_v10 = vpop.f32.mrf.mxu0  ;;  %v364_v11 = vpop.f32.mrf.mxu1 }
  0xc7   :  { %v154_v12 = vadd.f32 %v356_v10, %v293_v9  ;;  %v186_v13 = vadd.f32 %v364_v11, %v293_v9 }
  0xc8   :  { %v145_v14 = vpop.f32.mrf.mxu0  ;;  %v177_v15 = vpop.f32.mrf.mxu1 }
  0xc9   :  { %v329_v16 = vpack.c.bf16 %v154_v12, %v154_v12  ;;  %v337_v17 = vpack.c.bf16 %v186_v13, %v186_v13  ;;  %v146_v18 = vadd.f32 %v293_v9, %v145_v14  ;;  %v178_v19 = vadd.f32 %v293_v9, %v177_v15 }
  0xca   :  { %v357_v20 = vpop.f32.mrf.mxu0  ;;  %v365_v21 = vpop.f32.mrf.mxu1 }
  0xcb   :  { %275 = vst.msk [vmem:[%s506_s3 + $0x8] sm:$0xf] %vm272_vm1, %v329_v16  ;;  %283 = vst.msk [vmem:[%s506_s3 + $0x28] sm:$0xf] %vm272_vm1, %v337_v17  ;;  %v327_v22 = vpack.c.bf16 %v146_v18, %v146_v18  ;;  %v335_v23 = vpack.c.bf16 %v178_v19, %v178_v19  ;;  %v157_v24 = vadd.f32 %v357_v20, %v293_v9 }
  0xcc   :  { %v189_v25 = vadd.f32 %v365_v21, %v293_v9  ;;  %v148_v26 = vpop.f32.mrf.mxu0  ;;  %v180_v27 = vpop.f32.mrf.mxu1 }
  0xcd   :  { %273 = vst.msk [vmem:[%s506_s3] sm:$0xf] %vm272_vm1, %v327_v22  ;;  %281 = vst.msk [vmem:[%s506_s3 + $0x20] sm:$0xf] %vm272_vm1, %v335_v23  ;;  %v330_v28 = vpack.c.bf16 %v157_v24, %v157_v24  ;;  %v149_v30 = vadd.f32 %v293_v9, %v148_v26  ;;  %v181_v31 = vadd.f32 %v293_v9, %v180_v27 }
  0xce   :  { %v338_v29 = vpack.c.bf16 %v189_v25, %v189_v25  ;;  %v360_v32 = vpop.f32.mrf.mxu0  ;;  %v368_v33 = vpop.f32.mrf.mxu1 }
  0xcf   :  { %276 = vst.msk [vmem:[%s506_s3 + $0xc] sm:$0xf] %vm272_vm1, %v330_v28  ;;  %v328_v34 = vpack.c.bf16 %v149_v30, %v149_v30  ;;  %v336_v35 = vpack.c.bf16 %v181_v31, %v181_v31  ;;  %v170_v36 = vadd.f32 %v360_v32, %v293_v9  ;;  %v202_v37 = vadd.f32 %v368_v33, %v293_v9 }
  0xd0   :  { %284 = vst.msk [vmem:[%s506_s3 + $0x2c] sm:$0xf] %vm272_vm1, %v338_v29  ;;  %v161_v38 = vpop.f32.mrf.mxu0  ;;  %v193_v39 = vpop.f32.mrf.mxu1 }
  0xd1   :  { %274 = vst.msk [vmem:[%s506_s3 + $0x4] sm:$0xf] %vm272_vm1, %v328_v34  ;;  %282 = vst.msk [vmem:[%s506_s3 + $0x24] sm:$0xf] %vm272_vm1, %v336_v35  ;;  %v333_v40 = vpack.c.bf16 %v170_v36, %v170_v36  ;;  %v341_v41 = vpack.c.bf16 %v202_v37, %v202_v37  ;;  %v162_v42 = vadd.f32 %v293_v9, %v161_v38 }
  0xd2   :  { %v194_v43 = vadd.f32 %v293_v9, %v193_v39  ;;  %v361_v44 = vpop.f32.mrf.mxu0  ;;  %v369_v45 = vpop.f32.mrf.mxu1 }
  0xd3   :  { %279 = vst.msk [vmem:[%s506_s3 + $0x18] sm:$0xf] %vm272_vm1, %v333_v40  ;;  %287 = vst.msk [vmem:[%s506_s3 + $0x38] sm:$0xf] %vm272_vm1, %v341_v41  ;;  %v331_v46 = vpack.c.bf16 %v162_v42, %v162_v42  ;;  %v173_v48 = vadd.f32 %v361_v44, %v293_v9  ;;  %v205_v49 = vadd.f32 %v369_v45, %v293_v9 }
  0xd4   :  { %v339_v47 = vpack.c.bf16 %v194_v43, %v194_v43  ;;  %v164_v50 = vpop.f32.mrf.mxu0  ;;  %v196_v51 = vpop.f32.mrf.mxu1 }
  0xd5   :  { %277 = vst.msk [vmem:[%s506_s3 + $0x10] sm:$0xf] %vm272_vm1, %v331_v46  ;;  %v334_v52 = vpack.c.bf16 %v173_v48, %v173_v48  ;;  %v342_v53 = vpack.c.bf16 %v205_v49, %v205_v49  ;;  %v165_v54 = vadd.f32 %v293_v9, %v164_v50  ;;  %v197_v55 = vadd.f32 %v293_v9, %v196_v51 }
  0xd6   :  { %285 = vst.msk [vmem:[%s506_s3 + $0x30] sm:$0xf] %vm272_vm1, %v339_v47 }
  0xd7   :  { %280 = vst.msk [vmem:[%s506_s3 + $0x1c] sm:$0xf] %vm272_vm1, %v334_v52  ;;  %288 = vst.msk [vmem:[%s506_s3 + $0x3c] sm:$0xf] %vm272_vm1, %v342_v53  ;;  %v332_v56 = vpack.c.bf16 %v165_v54, %v165_v54  ;;  %v340_v57 = vpack.c.bf16 %v197_v55, %v197_v55 }
  0xd9   :  { %278 = vst.msk [vmem:[%s506_s3 + $0x14] sm:$0xf] %vm272_vm1, %v332_v56  ;;  %286 = vst.msk [vmem:[%s506_s3 + $0x34] sm:$0xf] %vm272_vm1, %v340_v57 }

</bundles_post_ra>
